<compile_context>
chip_gen: v6e
topology: v6e:2x2x1
jax: 0.10.0
libtpu: 0.0.40
codegen_flags: <defaults>
</compile_context>

<pallas_src>
import jax
import jax.numpy as jnp
from jax import lax
from jax.experimental import pallas as pl
from jax.experimental.pallas import tpu as pltpu

# Hyper-parameters (small, consistent with the module's constraints).
VOCAB = 8            # vocab_size
SEQ = VOCAB          # forward requires seq_len == vocab_size (see note above)
EMBED = 16           # embed_dim
HIDDEN = 32          # rnn_hidden_dim
FC1 = 128            # fc1 out_features
BATCH = 2
LEAKY_SLOPE = 0.01   # nn.LeakyReLU default negative_slope
MAX_BATCH_TILE = 256 # rows per grid step when packing large batches


def _rnn_classifier_kernel(ids_ref,   # (SEQ*BT, 1) int32 ids, time-major per tile
                           proj_ref,  # (VOCAB, 4H)  emb@W_ih + b, i/f/o cols *0.5
                           whh_ref,   # (HIDDEN, 4H) W_hh (h @ W_hh^T layout), i/f/o cols *0.5
                           w1_ref,    # (SEQ*HIDDEN, FC1) fc1 weight
                           b1_ref,    # (1, FC1)
                           w2_ref,    # (1, FC1)  fc2 weight as a row
                           b2_ref,    # (1, 1) in SMEM
                           out_ref):  # (BT, 1)
    H = HIDDEN
    bt = out_ref.shape[0]                 # batch tile (static)
    seq = ids_ref.shape[0] // bt          # static
    half = jnp.float32(0.5)

    # --- Embedding gather + input projection (+bias) for ALL timesteps. ---
    # onehot(ids) @ (embedding @ W_ih + b)  ==  embed(ids) @ W_ih + b
    onehot = (ids_ref[...] ==
              lax.broadcasted_iota(jnp.int32, (seq * bt, VOCAB), 1)
              ).astype(jnp.float32)                                      # (S*BT, V)
    xproj = jnp.dot(onehot, proj_ref[...],
                    preferred_element_type=jnp.float32)                  # (S*BT, 4H)

    whh = whh_ref[...]                     # hoisted: loaded once for all 8 steps

    # --- Fully unrolled LSTM recurrence; only h @ W_hh is on the critical path. ---
    h = jnp.zeros((bt, H), jnp.float32)    # init_hidden: zeros
    c = jnp.zeros((bt, H), jnp.float32)
    acc = jnp.zeros((bt, FC1), jnp.float32)  # fc1 partial accumulator
    for t in range(seq):                   # static trip count -> unrolled
        gates = xproj[t * bt:(t + 1) * bt, :] + jnp.dot(
            h, whh, preferred_element_type=jnp.float32)                  # (BT, 4H)
        # Single EUP pass: i/f/o columns were pre-scaled by 0.5, so tanh gives
        # tanh(x/2) there (-> sigmoid via affine) and tanh(x) for g.
        th = jnp.tanh(gates)
        i = half * th[:, 0:H] + half
        f = half * th[:, H:2 * H] + half
        g = th[:, 2 * H:3 * H]
        o = half * th[:, 3 * H:4 * H] + half
        c = f * c + i * g
        h = o * jnp.tanh(c)
        # fc1 partial for this timestep (flatten(permute(1,0,2)) layout means
        # fc1_out = sum_t h_t @ W1[t*H:(t+1)*H, :]); off the h->h chain.
        acc = acc + jnp.dot(h, w1_ref[t * H:(t + 1) * H, :],
                            preferred_element_type=jnp.float32)

    # --- fc1 bias -> LeakyReLU -> (Dropout = identity in eval) -> fc2 -> sigmoid ---
    z = acc + b1_ref[...]                                                # (BT, FC1)
    z = jnp.where(z >= 0, z, LEAKY_SLOPE * z)                            # LeakyReLU
    # TODO(synk): train-mode dropout (Bernoulli masking) intentionally omitted.
    # fc2 as VPU multiply + lane reduction (avoids an N=1 MXU fill/drain).
    z2 = jnp.sum(z * w2_ref[...], axis=-1, keepdims=True) + b2_ref[0, 0]  # (BT, 1)
    out_ref[...] = jax.nn.sigmoid(z2)


def _prepare_kernel_params(params):
    """Parameter-only folds (done once, outside the kernel):
       * proj  = embedding @ W_ih + (b_ih + b_hh), i/f/o columns scaled by 0.5
       * whh   = W_hh with i/f/o columns scaled by 0.5
       * fc2_w transposed to a (1, FC1) row for the VPU epilogue.
       Scaling by 0.5 is exact in floating point, so no extra rounding."""
    H = HIDDEN
    scale = jnp.concatenate([
        jnp.full((H,), 0.5, jnp.float32),   # i
        jnp.full((H,), 0.5, jnp.float32),   # f
        jnp.ones((H,), jnp.float32),        # g (tanh gate, unscaled)
        jnp.full((H,), 0.5, jnp.float32),   # o
    ])[None, :]
    proj = (params["embedding"] @ params["w_ih"] + params["b"]) * scale
    whh = params["w_hh"] * scale
    return dict(proj=proj.astype(jnp.float32),
                whh=whh.astype(jnp.float32),
                fc1_w=params["fc1_w"],
                fc1_b=params["fc1_b"],
                fc2_w_row=jnp.transpose(params["fc2_w"]),
                fc2_b=params["fc2_b"])


def rnn_classifier_forward(inputs, params):
    """inputs: (B, SEQ) int token ids -> (B, 1) float32 probabilities."""
    B, S = inputs.shape
    assert S == SEQ, "module's fc1 sizing requires seq_len == vocab_size"

    # Batch packing: pad to a multiple of the batch tile; shard tiles over a
    # "parallel" grid axis (both TCs on v7x; grid=(1,) for tiny batches).
    bt = min(max(8, -(-B // 8) * 8), MAX_BATCH_TILE)
    ntiles = -(-B // bt)
    pb = ntiles * bt
    tok = inputs.astype(jnp.int32)
    if pb != B:
        tok = jnp.pad(tok, ((0, pb - B), (0, 0)))     # pad rows with token 0
    # Per batch-tile, time-major flatten: row = tile*SEQ*bt + t*bt + b.
    ids = jnp.transpose(tok.reshape(ntiles, bt, SEQ), (0, 2, 1)).reshape(
        ntiles * SEQ * bt, 1)

    kp = _prepare_kernel_params(params)

    def full(shape):
        return pl.BlockSpec(shape, lambda i: (0, 0))

    out = pl.pallas_call(
        _rnn_classifier_kernel,
        out_shape=jax.ShapeDtypeStruct((pb, 1), jnp.float32),
        grid=(ntiles,),
        in_specs=[
            pl.BlockSpec((SEQ * bt, 1), lambda i: (i, 0)),   # ids (per tile)
            full((VOCAB, 4 * HIDDEN)),                       # proj table
            full((HIDDEN, 4 * HIDDEN)),                      # W_hh (scaled)
            full((SEQ * HIDDEN, FC1)),                       # fc1 weight
            full((1, FC1)),                                  # fc1 bias
            full((1, FC1)),                                  # fc2 weight row
            pl.BlockSpec(memory_space=pltpu.MemorySpace.SMEM),  # fc2 bias
        ],
        out_specs=pl.BlockSpec((bt, 1), lambda i: (i, 0)),
        compiler_params=pltpu.CompilerParams(
            dimension_semantics=("parallel",)),
    )(ids, kp["proj"], kp["whh"], kp["fc1_w"], kp["fc1_b"],
      kp["fc2_w_row"], kp["fc2_b"])
    return out[:B]


def init_params(key):
    """Deterministic synthetic init (mirrors the module's init recipe:
    orthogonal for >=2D LSTM params, normal for LSTM biases, PyTorch-default
    style for Embedding/Linear).  Not a checkpoint load.  Note: w_ih/w_hh are
    stored pre-transposed as (in, 4H); a real PyTorch checkpoint (4H, in)
    would need an explicit transpose here."""
    ks = jax.random.split(key, 9)
    orth = jax.nn.initializers.orthogonal()
    embedding = jax.random.normal(ks[0], (VOCAB, EMBED), jnp.float32)      # N(0,1)
    w_ih = orth(ks[1], (EMBED, 4 * HIDDEN)).astype(jnp.float32)
    w_hh = orth(ks[2], (HIDDEN, 4 * HIDDEN)).astype(jnp.float32)
    b_ih = jax.random.normal(ks[3], (4 * HIDDEN,), jnp.float32)
    b_hh = jax.random.normal(ks[4], (4 * HIDDEN,), jnp.float32)
    b = (b_ih + b_hh)[None, :]
    lim1 = 1.0 / float(jnp.sqrt(SEQ * HIDDEN))
    fc1_w = jax.random.uniform(ks[5], (SEQ * HIDDEN, FC1), jnp.float32, -lim1, lim1)
    fc1_b = jax.random.uniform(ks[6], (1, FC1), jnp.float32, -lim1, lim1)
    lim2 = 1.0 / float(jnp.sqrt(FC1))
    fc2_w = jax.random.uniform(ks[7], (FC1, 1), jnp.float32, -lim2, lim2)
    fc2_b = jax.random.uniform(ks[8], (1, 1), jnp.float32, -lim2, lim2)
    return dict(embedding=embedding, w_ih=w_ih, w_hh=w_hh, b=b,
                fc1_w=fc1_w, fc1_b=fc1_b, fc2_w=fc2_w, fc2_b=fc2_b)


def reference_forward(inputs, params):
    """Pure-JAX reference of the same forward pass (eval mode)."""
    B = inputs.shape[0]
    H = HIDDEN
    emb = jnp.take(params["embedding"], inputs, axis=0)
    x = jnp.transpose(emb, (1, 0, 2))                      # (S, B, E) time-major

    def step(carry, x_t):
        h, c = carry
        gates = x_t @ params["w_ih"] + h @ params["w_hh"] + params["b"]
        i = jax.nn.sigmoid(gates[:, :H])
        f = jax.nn.sigmoid(gates[:, H:2 * H])
        g = jnp.tanh(gates[:, 2 * H:3 * H])
        o = jax.nn.sigmoid(gates[:, 3 * H:])
        c = f * c + i * g
        h = o * jnp.tanh(c)
        return (h, c), h

    init = (jnp.zeros((B, H), jnp.float32), jnp.zeros((B, H), jnp.float32))
    _, hs = lax.scan(step, init, x)                        # (S, B, H)
    rnn_flat = jnp.transpose(hs, (1, 0, 2)).reshape(B, SEQ * H)
    z = rnn_flat @ params["fc1_w"] + params["fc1_b"]
    z = jnp.where(z >= 0, z, LEAKY_SLOPE * z)
    z2 = z @ params["fc2_w"] + params["fc2_b"]
    return jax.nn.sigmoid(z2)


if __name__ == "__main__":
    key = jax.random.PRNGKey(0)
    k_in, k_p = jax.random.split(key)
    params = init_params(k_p)
    inputs = jax.random.randint(k_in, (BATCH, SEQ), 0, VOCAB, dtype=jnp.int32)

    out = rnn_classifier_forward(inputs, params)
    out = jax.block_until_ready(out)

    ref = reference_forward(inputs, params)
    assert out.shape == (BATCH, 1), out.shape
    assert bool(jnp.all(jnp.isfinite(out)))
    assert bool(jnp.allclose(out, ref, atol=1e-5, rtol=1e-5)), (out, ref)
    print("KERNEL_OK")
</pallas_src>

<mosaic_0001>
module attributes {stable_mosaic.version = 11 : i64} {
  func.func @_rnn_classifier_kernel(%arg0: i32, %arg1: memref<64x1xi32, #tpu.memory_space<vmem>>, %arg2: memref<8x128xf32, #tpu.memory_space<vmem>>, %arg3: memref<32x128xf32, #tpu.memory_space<vmem>>, %arg4: memref<256x128xf32, #tpu.memory_space<vmem>>, %arg5: memref<1x128xf32, #tpu.memory_space<vmem>>, %arg6: memref<1x128xf32, #tpu.memory_space<vmem>>, %arg7: memref<1x1xf32, #tpu.memory_space<smem>>, %arg8: memref<8x1xf32, #tpu.memory_space<vmem>>) attributes {dimension_semantics = [#tpu.dimension_semantics<parallel>], iteration_bounds = array<i64: 1>, scalar_prefetch = 0 : i64, scratch_operands = 0 : i64, tpu.core_type = #tpu.core_type<tc>, window_params = [{transform_indices = @transform_0, window_bounds = array<i64: 64, 1>}, {pipeline_mode = #tpu.pipeline_mode<synchronous>, transform_indices = @transform_1, window_bounds = array<i64: 8, 128>}, {pipeline_mode = #tpu.pipeline_mode<synchronous>, transform_indices = @transform_2, window_bounds = array<i64: 32, 128>}, {pipeline_mode = #tpu.pipeline_mode<synchronous>, transform_indices = @transform_3, window_bounds = array<i64: 256, 128>}, {pipeline_mode = #tpu.pipeline_mode<synchronous>, transform_indices = @transform_4, window_bounds = array<i64: 1, 128>}, {pipeline_mode = #tpu.pipeline_mode<synchronous>, transform_indices = @transform_5, window_bounds = array<i64: 1, 128>}, {transform_indices = @transform_6, window_bounds = array<i64: 1, 1>}, {transform_indices = @transform_7, window_bounds = array<i64: 8, 1>}]} {
    %c0 = arith.constant 0 : index
    %c0_0 = arith.constant 0 : index
    %0 = vector.load %arg1[%c0, %c0_0] : memref<64x1xi32, #tpu.memory_space<vmem>>, vector<64x1xi32>
    %1 = tpu.iota {dimensions = array<i32: 1>} : vector<64x8xi32>
    %2 = vector.broadcast %0 : vector<64x1xi32> to vector<64x8xi32>
    %3 = arith.cmpi eq, %2, %1 : vector<64x8xi32>
    %4 = arith.extui %3 : vector<64x8xi1> to vector<64x8xi32>
    %5 = arith.sitofp %4 : vector<64x8xi32> to vector<64x8xf32>
    %c0_1 = arith.constant 0 : index
    %c0_2 = arith.constant 0 : index
    %6 = vector.load %arg2[%c0_1, %c0_2] : memref<8x128xf32, #tpu.memory_space<vmem>>, vector<8x128xf32>
    %cst = arith.constant dense<0.000000e+00> : vector<64x128xf32>
    %7 = tpu.matmul %5, %6, %cst {dimension_numbers = #tpu.dot_dimension_numbers<[1], [0], [0], [1], [0, 0, 1, 1], [], []>} : vector<64x8xf32>, vector<8x128xf32>, vector<64x128xf32> -> vector<64x128xf32>
    %c0_3 = arith.constant 0 : index
    %c0_4 = arith.constant 0 : index
    %8 = vector.load %arg3[%c0_3, %c0_4] : memref<32x128xf32, #tpu.memory_space<vmem>>, vector<32x128xf32>
    %cst_5 = arith.constant 0.000000e+00 : f32
    %9 = vector.broadcast %cst_5 : f32 to vector<8x32xf32>
    %cst_6 = arith.constant 0.000000e+00 : f32
    %10 = vector.broadcast %cst_6 : f32 to vector<8x32xf32>
    %cst_7 = arith.constant 0.000000e+00 : f32
    %11 = vector.broadcast %cst_7 : f32 to vector<8x128xf32>
    %12 = vector.extract_strided_slice %7 {offsets = [0, 0], sizes = [8, 128], strides = [1, 1]} : vector<64x128xf32> to vector<8x128xf32>
    %cst_8 = arith.constant dense<0.000000e+00> : vector<8x128xf32>
    %13 = tpu.matmul %9, %8, %cst_8 {dimension_numbers = #tpu.dot_dimension_numbers<[1], [0], [0], [1], [0, 0, 1, 1], [], []>} : vector<8x32xf32>, vector<32x128xf32>, vector<8x128xf32> -> vector<8x128xf32>
    %14 = arith.addf %12, %13 : vector<8x128xf32>
    %15 = math.tanh %14 : vector<8x128xf32>
    %16 = vector.extract_strided_slice %15 {offsets = [0, 0], sizes = [8, 32], strides = [1, 1]} : vector<8x128xf32> to vector<8x32xf32>
    %cst_9 = arith.constant 5.000000e-01 : f32
    %17 = vector.broadcast %cst_9 : f32 to vector<8x32xf32>
    %18 = arith.mulf %17, %16 : vector<8x32xf32>
    %cst_10 = arith.constant 5.000000e-01 : f32
    %19 = vector.broadcast %cst_10 : f32 to vector<8x32xf32>
    %20 = arith.addf %18, %19 : vector<8x32xf32>
    %21 = vector.extract_strided_slice %15 {offsets = [0, 32], sizes = [8, 32], strides = [1, 1]} : vector<8x128xf32> to vector<8x32xf32>
    %cst_11 = arith.constant 5.000000e-01 : f32
    %22 = vector.broadcast %cst_11 : f32 to vector<8x32xf32>
    %23 = arith.mulf %22, %21 : vector<8x32xf32>
    %cst_12 = arith.constant 5.000000e-01 : f32
    %24 = vector.broadcast %cst_12 : f32 to vector<8x32xf32>
    %25 = arith.addf %23, %24 : vector<8x32xf32>
    %26 = vector.extract_strided_slice %15 {offsets = [0, 64], sizes = [8, 32], strides = [1, 1]} : vector<8x128xf32> to vector<8x32xf32>
    %27 = vector.extract_strided_slice %15 {offsets = [0, 96], sizes = [8, 32], strides = [1, 1]} : vector<8x128xf32> to vector<8x32xf32>
    %cst_13 = arith.constant 5.000000e-01 : f32
    %28 = vector.broadcast %cst_13 : f32 to vector<8x32xf32>
    %29 = arith.mulf %28, %27 : vector<8x32xf32>
    %cst_14 = arith.constant 5.000000e-01 : f32
    %30 = vector.broadcast %cst_14 : f32 to vector<8x32xf32>
    %31 = arith.addf %29, %30 : vector<8x32xf32>
    %32 = arith.mulf %25, %10 : vector<8x32xf32>
    %33 = arith.mulf %20, %26 : vector<8x32xf32>
    %34 = arith.addf %32, %33 : vector<8x32xf32>
    %35 = math.tanh %34 : vector<8x32xf32>
    %36 = arith.mulf %31, %35 : vector<8x32xf32>
    %c0_15 = arith.constant 0 : index
    %c0_16 = arith.constant 0 : index
    %37 = vector.load %arg4[%c0_15, %c0_16] : memref<256x128xf32, #tpu.memory_space<vmem>>, vector<32x128xf32>
    %cst_17 = arith.constant dense<0.000000e+00> : vector<8x128xf32>
    %38 = tpu.matmul %36, %37, %cst_17 {dimension_numbers = #tpu.dot_dimension_numbers<[1], [0], [0], [1], [0, 0, 1, 1], [], []>} : vector<8x32xf32>, vector<32x128xf32>, vector<8x128xf32> -> vector<8x128xf32>
    %39 = arith.addf %11, %38 : vector<8x128xf32>
    %40 = vector.extract_strided_slice %7 {offsets = [8, 0], sizes = [8, 128], strides = [1, 1]} : vector<64x128xf32> to vector<8x128xf32>
    %cst_18 = arith.constant dense<0.000000e+00> : vector<8x128xf32>
    %41 = tpu.matmul %36, %8, %cst_18 {dimension_numbers = #tpu.dot_dimension_numbers<[1], [0], [0], [1], [0, 0, 1, 1], [], []>} : vector<8x32xf32>, vector<32x128xf32>, vector<8x128xf32> -> vector<8x128xf32>
    %42 = arith.addf %40, %41 : vector<8x128xf32>
    %43 = math.tanh %42 : vector<8x128xf32>
    %44 = vector.extract_strided_slice %43 {offsets = [0, 0], sizes = [8, 32], strides = [1, 1]} : vector<8x128xf32> to vector<8x32xf32>
    %cst_19 = arith.constant 5.000000e-01 : f32
    %45 = vector.broadcast %cst_19 : f32 to vector<8x32xf32>
    %46 = arith.mulf %45, %44 : vector<8x32xf32>
    %cst_20 = arith.constant 5.000000e-01 : f32
    %47 = vector.broadcast %cst_20 : f32 to vector<8x32xf32>
    %48 = arith.addf %46, %47 : vector<8x32xf32>
    %49 = vector.extract_strided_slice %43 {offsets = [0, 32], sizes = [8, 32], strides = [1, 1]} : vector<8x128xf32> to vector<8x32xf32>
    %cst_21 = arith.constant 5.000000e-01 : f32
    %50 = vector.broadcast %cst_21 : f32 to vector<8x32xf32>
    %51 = arith.mulf %50, %49 : vector<8x32xf32>
    %cst_22 = arith.constant 5.000000e-01 : f32
    %52 = vector.broadcast %cst_22 : f32 to vector<8x32xf32>
    %53 = arith.addf %51, %52 : vector<8x32xf32>
    %54 = vector.extract_strided_slice %43 {offsets = [0, 64], sizes = [8, 32], strides = [1, 1]} : vector<8x128xf32> to vector<8x32xf32>
    %55 = vector.extract_strided_slice %43 {offsets = [0, 96], sizes = [8, 32], strides = [1, 1]} : vector<8x128xf32> to vector<8x32xf32>
    %cst_23 = arith.constant 5.000000e-01 : f32
    %56 = vector.broadcast %cst_23 : f32 to vector<8x32xf32>
    %57 = arith.mulf %56, %55 : vector<8x32xf32>
    %cst_24 = arith.constant 5.000000e-01 : f32
    %58 = vector.broadcast %cst_24 : f32 to vector<8x32xf32>
    %59 = arith.addf %57, %58 : vector<8x32xf32>
    %60 = arith.mulf %53, %34 : vector<8x32xf32>
    %61 = arith.mulf %48, %54 : vector<8x32xf32>
    %62 = arith.addf %60, %61 : vector<8x32xf32>
    %63 = math.tanh %62 : vector<8x32xf32>
    %64 = arith.mulf %59, %63 : vector<8x32xf32>
    %c32 = arith.constant 32 : index
    %c0_25 = arith.constant 0 : index
    %65 = vector.load %arg4[%c32, %c0_25] : memref<256x128xf32, #tpu.memory_space<vmem>>, vector<32x128xf32>
    %cst_26 = arith.constant dense<0.000000e+00> : vector<8x128xf32>
    %66 = tpu.matmul %64, %65, %cst_26 {dimension_numbers = #tpu.dot_dimension_numbers<[1], [0], [0], [1], [0, 0, 1, 1], [], []>} : vector<8x32xf32>, vector<32x128xf32>, vector<8x128xf32> -> vector<8x128xf32>
    %67 = arith.addf %39, %66 : vector<8x128xf32>
    %68 = vector.extract_strided_slice %7 {offsets = [16, 0], sizes = [8, 128], strides = [1, 1]} : vector<64x128xf32> to vector<8x128xf32>
    %cst_27 = arith.constant dense<0.000000e+00> : vector<8x128xf32>
    %69 = tpu.matmul %64, %8, %cst_27 {dimension_numbers = #tpu.dot_dimension_numbers<[1], [0], [0], [1], [0, 0, 1, 1], [], []>} : vector<8x32xf32>, vector<32x128xf32>, vector<8x128xf32> -> vector<8x128xf32>
    %70 = arith.addf %68, %69 : vector<8x128xf32>
    %71 = math.tanh %70 : vector<8x128xf32>
    %72 = vector.extract_strided_slice %71 {offsets = [0, 0], sizes = [8, 32], strides = [1, 1]} : vector<8x128xf32> to vector<8x32xf32>
    %cst_28 = arith.constant 5.000000e-01 : f32
    %73 = vector.broadcast %cst_28 : f32 to vector<8x32xf32>
    %74 = arith.mulf %73, %72 : vector<8x32xf32>
    %cst_29 = arith.constant 5.000000e-01 : f32
    %75 = vector.broadcast %cst_29 : f32 to vector<8x32xf32>
    %76 = arith.addf %74, %75 : vector<8x32xf32>
    %77 = vector.extract_strided_slice %71 {offsets = [0, 32], sizes = [8, 32], strides = [1, 1]} : vector<8x128xf32> to vector<8x32xf32>
    %cst_30 = arith.constant 5.000000e-01 : f32
    %78 = vector.broadcast %cst_30 : f32 to vector<8x32xf32>
    %79 = arith.mulf %78, %77 : vector<8x32xf32>
    %cst_31 = arith.constant 5.000000e-01 : f32
    %80 = vector.broadcast %cst_31 : f32 to vector<8x32xf32>
    %81 = arith.addf %79, %80 : vector<8x32xf32>
    %82 = vector.extract_strided_slice %71 {offsets = [0, 64], sizes = [8, 32], strides = [1, 1]} : vector<8x128xf32> to vector<8x32xf32>
    %83 = vector.extract_strided_slice %71 {offsets = [0, 96], sizes = [8, 32], strides = [1, 1]} : vector<8x128xf32> to vector<8x32xf32>
    %cst_32 = arith.constant 5.000000e-01 : f32
    %84 = vector.broadcast %cst_32 : f32 to vector<8x32xf32>
    %85 = arith.mulf %84, %83 : vector<8x32xf32>
    %cst_33 = arith.constant 5.000000e-01 : f32
    %86 = vector.broadcast %cst_33 : f32 to vector<8x32xf32>
    %87 = arith.addf %85, %86 : vector<8x32xf32>
    %88 = arith.mulf %81, %62 : vector<8x32xf32>
    %89 = arith.mulf %76, %82 : vector<8x32xf32>
    %90 = arith.addf %88, %89 : vector<8x32xf32>
    %91 = math.tanh %90 : vector<8x32xf32>
    %92 = arith.mulf %87, %91 : vector<8x32xf32>
    %c64 = arith.constant 64 : index
    %c0_34 = arith.constant 0 : index
    %93 = vector.load %arg4[%c64, %c0_34] : memref<256x128xf32, #tpu.memory_space<vmem>>, vector<32x128xf32>
    %cst_35 = arith.constant dense<0.000000e+00> : vector<8x128xf32>
    %94 = tpu.matmul %92, %93, %cst_35 {dimension_numbers = #tpu.dot_dimension_numbers<[1], [0], [0], [1], [0, 0, 1, 1], [], []>} : vector<8x32xf32>, vector<32x128xf32>, vector<8x128xf32> -> vector<8x128xf32>
    %95 = arith.addf %67, %94 : vector<8x128xf32>
    %96 = vector.extract_strided_slice %7 {offsets = [24, 0], sizes = [8, 128], strides = [1, 1]} : vector<64x128xf32> to vector<8x128xf32>
    %cst_36 = arith.constant dense<0.000000e+00> : vector<8x128xf32>
    %97 = tpu.matmul %92, %8, %cst_36 {dimension_numbers = #tpu.dot_dimension_numbers<[1], [0], [0], [1], [0, 0, 1, 1], [], []>} : vector<8x32xf32>, vector<32x128xf32>, vector<8x128xf32> -> vector<8x128xf32>
    %98 = arith.addf %96, %97 : vector<8x128xf32>
    %99 = math.tanh %98 : vector<8x128xf32>
    %100 = vector.extract_strided_slice %99 {offsets = [0, 0], sizes = [8, 32], strides = [1, 1]} : vector<8x128xf32> to vector<8x32xf32>
    %cst_37 = arith.constant 5.000000e-01 : f32
    %101 = vector.broadcast %cst_37 : f32 to vector<8x32xf32>
    %102 = arith.mulf %101, %100 : vector<8x32xf32>
    %cst_38 = arith.constant 5.000000e-01 : f32
    %103 = vector.broadcast %cst_38 : f32 to vector<8x32xf32>
    %104 = arith.addf %102, %103 : vector<8x32xf32>
    %105 = vector.extract_strided_slice %99 {offsets = [0, 32], sizes = [8, 32], strides = [1, 1]} : vector<8x128xf32> to vector<8x32xf32>
    %cst_39 = arith.constant 5.000000e-01 : f32
    %106 = vector.broadcast %cst_39 : f32 to vector<8x32xf32>
    %107 = arith.mulf %106, %105 : vector<8x32xf32>
    %cst_40 = arith.constant 5.000000e-01 : f32
    %108 = vector.broadcast %cst_40 : f32 to vector<8x32xf32>
    %109 = arith.addf %107, %108 : vector<8x32xf32>
    %110 = vector.extract_strided_slice %99 {offsets = [0, 64], sizes = [8, 32], strides = [1, 1]} : vector<8x128xf32> to vector<8x32xf32>
    %111 = vector.extract_strided_slice %99 {offsets = [0, 96], sizes = [8, 32], strides = [1, 1]} : vector<8x128xf32> to vector<8x32xf32>
    %cst_41 = arith.constant 5.000000e-01 : f32
    %112 = vector.broadcast %cst_41 : f32 to vector<8x32xf32>
    %113 = arith.mulf %112, %111 : vector<8x32xf32>
    %cst_42 = arith.constant 5.000000e-01 : f32
    %114 = vector.broadcast %cst_42 : f32 to vector<8x32xf32>
    %115 = arith.addf %113, %114 : vector<8x32xf32>
    %116 = arith.mulf %109, %90 : vector<8x32xf32>
    %117 = arith.mulf %104, %110 : vector<8x32xf32>
    %118 = arith.addf %116, %117 : vector<8x32xf32>
    %119 = math.tanh %118 : vector<8x32xf32>
    %120 = arith.mulf %115, %119 : vector<8x32xf32>
    %c96 = arith.constant 96 : index
    %c0_43 = arith.constant 0 : index
    %121 = vector.load %arg4[%c96, %c0_43] : memref<256x128xf32, #tpu.memory_space<vmem>>, vector<32x128xf32>
    %cst_44 = arith.constant dense<0.000000e+00> : vector<8x128xf32>
    %122 = tpu.matmul %120, %121, %cst_44 {dimension_numbers = #tpu.dot_dimension_numbers<[1], [0], [0], [1], [0, 0, 1, 1], [], []>} : vector<8x32xf32>, vector<32x128xf32>, vector<8x128xf32> -> vector<8x128xf32>
    %123 = arith.addf %95, %122 : vector<8x128xf32>
    %124 = vector.extract_strided_slice %7 {offsets = [32, 0], sizes = [8, 128], strides = [1, 1]} : vector<64x128xf32> to vector<8x128xf32>
    %cst_45 = arith.constant dense<0.000000e+00> : vector<8x128xf32>
    %125 = tpu.matmul %120, %8, %cst_45 {dimension_numbers = #tpu.dot_dimension_numbers<[1], [0], [0], [1], [0, 0, 1, 1], [], []>} : vector<8x32xf32>, vector<32x128xf32>, vector<8x128xf32> -> vector<8x128xf32>
    %126 = arith.addf %124, %125 : vector<8x128xf32>
    %127 = math.tanh %126 : vector<8x128xf32>
    %128 = vector.extract_strided_slice %127 {offsets = [0, 0], sizes = [8, 32], strides = [1, 1]} : vector<8x128xf32> to vector<8x32xf32>
    %cst_46 = arith.constant 5.000000e-01 : f32
    %129 = vector.broadcast %cst_46 : f32 to vector<8x32xf32>
    %130 = arith.mulf %129, %128 : vector<8x32xf32>
    %cst_47 = arith.constant 5.000000e-01 : f32
    %131 = vector.broadcast %cst_47 : f32 to vector<8x32xf32>
    %132 = arith.addf %130, %131 : vector<8x32xf32>
    %133 = vector.extract_strided_slice %127 {offsets = [0, 32], sizes = [8, 32], strides = [1, 1]} : vector<8x128xf32> to vector<8x32xf32>
    %cst_48 = arith.constant 5.000000e-01 : f32
    %134 = vector.broadcast %cst_48 : f32 to vector<8x32xf32>
    %135 = arith.mulf %134, %133 : vector<8x32xf32>
    %cst_49 = arith.constant 5.000000e-01 : f32
    %136 = vector.broadcast %cst_49 : f32 to vector<8x32xf32>
    %137 = arith.addf %135, %136 : vector<8x32xf32>
    %138 = vector.extract_strided_slice %127 {offsets = [0, 64], sizes = [8, 32], strides = [1, 1]} : vector<8x128xf32> to vector<8x32xf32>
    %139 = vector.extract_strided_slice %127 {offsets = [0, 96], sizes = [8, 32], strides = [1, 1]} : vector<8x128xf32> to vector<8x32xf32>
    %cst_50 = arith.constant 5.000000e-01 : f32
    %140 = vector.broadcast %cst_50 : f32 to vector<8x32xf32>
    %141 = arith.mulf %140, %139 : vector<8x32xf32>
    %cst_51 = arith.constant 5.000000e-01 : f32
    %142 = vector.broadcast %cst_51 : f32 to vector<8x32xf32>
    %143 = arith.addf %141, %142 : vector<8x32xf32>
    %144 = arith.mulf %137, %118 : vector<8x32xf32>
    %145 = arith.mulf %132, %138 : vector<8x32xf32>
    %146 = arith.addf %144, %145 : vector<8x32xf32>
    %147 = math.tanh %146 : vector<8x32xf32>
    %148 = arith.mulf %143, %147 : vector<8x32xf32>
    %c128 = arith.constant 128 : index
    %c0_52 = arith.constant 0 : index
    %149 = vector.load %arg4[%c128, %c0_52] : memref<256x128xf32, #tpu.memory_space<vmem>>, vector<32x128xf32>
    %cst_53 = arith.constant dense<0.000000e+00> : vector<8x128xf32>
    %150 = tpu.matmul %148, %149, %cst_53 {dimension_numbers = #tpu.dot_dimension_numbers<[1], [0], [0], [1], [0, 0, 1, 1], [], []>} : vector<8x32xf32>, vector<32x128xf32>, vector<8x128xf32> -> vector<8x128xf32>
    %151 = arith.addf %123, %150 : vector<8x128xf32>
    %152 = vector.extract_strided_slice %7 {offsets = [40, 0], sizes = [8, 128], strides = [1, 1]} : vector<64x128xf32> to vector<8x128xf32>
    %cst_54 = arith.constant dense<0.000000e+00> : vector<8x128xf32>
    %153 = tpu.matmul %148, %8, %cst_54 {dimension_numbers = #tpu.dot_dimension_numbers<[1], [0], [0], [1], [0, 0, 1, 1], [], []>} : vector<8x32xf32>, vector<32x128xf32>, vector<8x128xf32> -> vector<8x128xf32>
    %154 = arith.addf %152, %153 : vector<8x128xf32>
    %155 = math.tanh %154 : vector<8x128xf32>
    %156 = vector.extract_strided_slice %155 {offsets = [0, 0], sizes = [8, 32], strides = [1, 1]} : vector<8x128xf32> to vector<8x32xf32>
    %cst_55 = arith.constant 5.000000e-01 : f32
    %157 = vector.broadcast %cst_55 : f32 to vector<8x32xf32>
    %158 = arith.mulf %157, %156 : vector<8x32xf32>
    %cst_56 = arith.constant 5.000000e-01 : f32
    %159 = vector.broadcast %cst_56 : f32 to vector<8x32xf32>
    %160 = arith.addf %158, %159 : vector<8x32xf32>
    %161 = vector.extract_strided_slice %155 {offsets = [0, 32], sizes = [8, 32], strides = [1, 1]} : vector<8x128xf32> to vector<8x32xf32>
    %cst_57 = arith.constant 5.000000e-01 : f32
    %162 = vector.broadcast %cst_57 : f32 to vector<8x32xf32>
    %163 = arith.mulf %162, %161 : vector<8x32xf32>
    %cst_58 = arith.constant 5.000000e-01 : f32
    %164 = vector.broadcast %cst_58 : f32 to vector<8x32xf32>
    %165 = arith.addf %163, %164 : vector<8x32xf32>
    %166 = vector.extract_strided_slice %155 {offsets = [0, 64], sizes = [8, 32], strides = [1, 1]} : vector<8x128xf32> to vector<8x32xf32>
    %167 = vector.extract_strided_slice %155 {offsets = [0, 96], sizes = [8, 32], strides = [1, 1]} : vector<8x128xf32> to vector<8x32xf32>
    %cst_59 = arith.constant 5.000000e-01 : f32
    %168 = vector.broadcast %cst_59 : f32 to vector<8x32xf32>
    %169 = arith.mulf %168, %167 : vector<8x32xf32>
    %cst_60 = arith.constant 5.000000e-01 : f32
    %170 = vector.broadcast %cst_60 : f32 to vector<8x32xf32>
    %171 = arith.addf %169, %170 : vector<8x32xf32>
    %172 = arith.mulf %165, %146 : vector<8x32xf32>
    %173 = arith.mulf %160, %166 : vector<8x32xf32>
    %174 = arith.addf %172, %173 : vector<8x32xf32>
    %175 = math.tanh %174 : vector<8x32xf32>
    %176 = arith.mulf %171, %175 : vector<8x32xf32>
    %c160 = arith.constant 160 : index
    %c0_61 = arith.constant 0 : index
    %177 = vector.load %arg4[%c160, %c0_61] : memref<256x128xf32, #tpu.memory_space<vmem>>, vector<32x128xf32>
    %cst_62 = arith.constant dense<0.000000e+00> : vector<8x128xf32>
    %178 = tpu.matmul %176, %177, %cst_62 {dimension_numbers = #tpu.dot_dimension_numbers<[1], [0], [0], [1], [0, 0, 1, 1], [], []>} : vector<8x32xf32>, vector<32x128xf32>, vector<8x128xf32> -> vector<8x128xf32>
    %179 = arith.addf %151, %178 : vector<8x128xf32>
    %180 = vector.extract_strided_slice %7 {offsets = [48, 0], sizes = [8, 128], strides = [1, 1]} : vector<64x128xf32> to vector<8x128xf32>
    %cst_63 = arith.constant dense<0.000000e+00> : vector<8x128xf32>
    %181 = tpu.matmul %176, %8, %cst_63 {dimension_numbers = #tpu.dot_dimension_numbers<[1], [0], [0], [1], [0, 0, 1, 1], [], []>} : vector<8x32xf32>, vector<32x128xf32>, vector<8x128xf32> -> vector<8x128xf32>
    %182 = arith.addf %180, %181 : vector<8x128xf32>
    %183 = math.tanh %182 : vector<8x128xf32>
    %184 = vector.extract_strided_slice %183 {offsets = [0, 0], sizes = [8, 32], strides = [1, 1]} : vector<8x128xf32> to vector<8x32xf32>
    %cst_64 = arith.constant 5.000000e-01 : f32
    %185 = vector.broadcast %cst_64 : f32 to vector<8x32xf32>
    %186 = arith.mulf %185, %184 : vector<8x32xf32>
    %cst_65 = arith.constant 5.000000e-01 : f32
    %187 = vector.broadcast %cst_65 : f32 to vector<8x32xf32>
    %188 = arith.addf %186, %187 : vector<8x32xf32>
    %189 = vector.extract_strided_slice %183 {offsets = [0, 32], sizes = [8, 32], strides = [1, 1]} : vector<8x128xf32> to vector<8x32xf32>
    %cst_66 = arith.constant 5.000000e-01 : f32
    %190 = vector.broadcast %cst_66 : f32 to vector<8x32xf32>
    %191 = arith.mulf %190, %189 : vector<8x32xf32>
    %cst_67 = arith.constant 5.000000e-01 : f32
    %192 = vector.broadcast %cst_67 : f32 to vector<8x32xf32>
    %193 = arith.addf %191, %192 : vector<8x32xf32>
    %194 = vector.extract_strided_slice %183 {offsets = [0, 64], sizes = [8, 32], strides = [1, 1]} : vector<8x128xf32> to vector<8x32xf32>
    %195 = vector.extract_strided_slice %183 {offsets = [0, 96], sizes = [8, 32], strides = [1, 1]} : vector<8x128xf32> to vector<8x32xf32>
    %cst_68 = arith.constant 5.000000e-01 : f32
    %196 = vector.broadcast %cst_68 : f32 to vector<8x32xf32>
    %197 = arith.mulf %196, %195 : vector<8x32xf32>
    %cst_69 = arith.constant 5.000000e-01 : f32
    %198 = vector.broadcast %cst_69 : f32 to vector<8x32xf32>
    %199 = arith.addf %197, %198 : vector<8x32xf32>
    %200 = arith.mulf %193, %174 : vector<8x32xf32>
    %201 = arith.mulf %188, %194 : vector<8x32xf32>
    %202 = arith.addf %200, %201 : vector<8x32xf32>
    %203 = math.tanh %202 : vector<8x32xf32>
    %204 = arith.mulf %199, %203 : vector<8x32xf32>
    %c192 = arith.constant 192 : index
    %c0_70 = arith.constant 0 : index
    %205 = vector.load %arg4[%c192, %c0_70] : memref<256x128xf32, #tpu.memory_space<vmem>>, vector<32x128xf32>
    %cst_71 = arith.constant dense<0.000000e+00> : vector<8x128xf32>
    %206 = tpu.matmul %204, %205, %cst_71 {dimension_numbers = #tpu.dot_dimension_numbers<[1], [0], [0], [1], [0, 0, 1, 1], [], []>} : vector<8x32xf32>, vector<32x128xf32>, vector<8x128xf32> -> vector<8x128xf32>
    %207 = arith.addf %179, %206 : vector<8x128xf32>
    %208 = vector.extract_strided_slice %7 {offsets = [56, 0], sizes = [8, 128], strides = [1, 1]} : vector<64x128xf32> to vector<8x128xf32>
    %cst_72 = arith.constant dense<0.000000e+00> : vector<8x128xf32>
    %209 = tpu.matmul %204, %8, %cst_72 {dimension_numbers = #tpu.dot_dimension_numbers<[1], [0], [0], [1], [0, 0, 1, 1], [], []>} : vector<8x32xf32>, vector<32x128xf32>, vector<8x128xf32> -> vector<8x128xf32>
    %210 = arith.addf %208, %209 : vector<8x128xf32>
    %211 = math.tanh %210 : vector<8x128xf32>
    %212 = vector.extract_strided_slice %211 {offsets = [0, 0], sizes = [8, 32], strides = [1, 1]} : vector<8x128xf32> to vector<8x32xf32>
    %cst_73 = arith.constant 5.000000e-01 : f32
    %213 = vector.broadcast %cst_73 : f32 to vector<8x32xf32>
    %214 = arith.mulf %213, %212 : vector<8x32xf32>
    %cst_74 = arith.constant 5.000000e-01 : f32
    %215 = vector.broadcast %cst_74 : f32 to vector<8x32xf32>
    %216 = arith.addf %214, %215 : vector<8x32xf32>
    %217 = vector.extract_strided_slice %211 {offsets = [0, 32], sizes = [8, 32], strides = [1, 1]} : vector<8x128xf32> to vector<8x32xf32>
    %cst_75 = arith.constant 5.000000e-01 : f32
    %218 = vector.broadcast %cst_75 : f32 to vector<8x32xf32>
    %219 = arith.mulf %218, %217 : vector<8x32xf32>
    %cst_76 = arith.constant 5.000000e-01 : f32
    %220 = vector.broadcast %cst_76 : f32 to vector<8x32xf32>
    %221 = arith.addf %219, %220 : vector<8x32xf32>
    %222 = vector.extract_strided_slice %211 {offsets = [0, 64], sizes = [8, 32], strides = [1, 1]} : vector<8x128xf32> to vector<8x32xf32>
    %223 = vector.extract_strided_slice %211 {offsets = [0, 96], sizes = [8, 32], strides = [1, 1]} : vector<8x128xf32> to vector<8x32xf32>
    %cst_77 = arith.constant 5.000000e-01 : f32
    %224 = vector.broadcast %cst_77 : f32 to vector<8x32xf32>
    %225 = arith.mulf %224, %223 : vector<8x32xf32>
    %cst_78 = arith.constant 5.000000e-01 : f32
    %226 = vector.broadcast %cst_78 : f32 to vector<8x32xf32>
    %227 = arith.addf %225, %226 : vector<8x32xf32>
    %228 = arith.mulf %221, %202 : vector<8x32xf32>
    %229 = arith.mulf %216, %222 : vector<8x32xf32>
    %230 = arith.addf %228, %229 : vector<8x32xf32>
    %231 = math.tanh %230 : vector<8x32xf32>
    %232 = arith.mulf %227, %231 : vector<8x32xf32>
    %c224 = arith.constant 224 : index
    %c0_79 = arith.constant 0 : index
    %233 = vector.load %arg4[%c224, %c0_79] : memref<256x128xf32, #tpu.memory_space<vmem>>, vector<32x128xf32>
    %cst_80 = arith.constant dense<0.000000e+00> : vector<8x128xf32>
    %234 = tpu.matmul %232, %233, %cst_80 {dimension_numbers = #tpu.dot_dimension_numbers<[1], [0], [0], [1], [0, 0, 1, 1], [], []>} : vector<8x32xf32>, vector<32x128xf32>, vector<8x128xf32> -> vector<8x128xf32>
    %235 = arith.addf %207, %234 : vector<8x128xf32>
    %c0_81 = arith.constant 0 : index
    %c0_82 = arith.constant 0 : index
    %236 = vector.load %arg5[%c0_81, %c0_82] : memref<1x128xf32, #tpu.memory_space<vmem>>, vector<1x128xf32>
    %237 = vector.broadcast %236 : vector<1x128xf32> to vector<8x128xf32>
    %238 = arith.addf %235, %237 : vector<8x128xf32>
    %cst_83 = arith.constant 0.000000e+00 : f32
    %239 = vector.broadcast %cst_83 : f32 to vector<8x128xf32>
    %240 = arith.cmpf oge, %238, %239 : vector<8x128xf32>
    %cst_84 = arith.constant 0.00999999977 : f32
    %241 = vector.broadcast %cst_84 : f32 to vector<8x128xf32>
    %242 = arith.mulf %241, %238 : vector<8x128xf32>
    %243 = arith.select %240, %238, %242 : vector<8x128xi1>, vector<8x128xf32>
    %c0_85 = arith.constant 0 : index
    %c0_86 = arith.constant 0 : index
    %244 = vector.load %arg6[%c0_85, %c0_86] : memref<1x128xf32, #tpu.memory_space<vmem>>, vector<1x128xf32>
    %245 = vector.broadcast %244 : vector<1x128xf32> to vector<8x128xf32>
    %246 = arith.mulf %243, %245 : vector<8x128xf32>
    %cst_87 = arith.constant dense<0.000000e+00> : vector<8xf32>
    %247 = vector.multi_reduction <add>, %246, %cst_87 [1] : vector<8x128xf32> to vector<8xf32>
    %248 = vector.shape_cast %247 : vector<8xf32> to vector<8x1xf32>
    %c0_88 = arith.constant 0 : index
    %c0_89 = arith.constant 0 : index
    %249 = memref.load %arg7[%c0_88, %c0_89] : memref<1x1xf32, #tpu.memory_space<smem>>
    %250 = vector.broadcast %249 : f32 to vector<8x1xf32>
    %251 = arith.addf %248, %250 : vector<8x1xf32>
    %252 = arith.negf %251 : vector<8x1xf32>
    %253 = math.exp %252 : vector<8x1xf32>
    %cst_90 = arith.constant 1.000000e+00 : f32
    %254 = vector.broadcast %cst_90 : f32 to vector<8x1xf32>
    %255 = arith.addf %254, %253 : vector<8x1xf32>
    %256 = arith.divf %254, %255 : vector<8x1xf32>
    %c0_91 = arith.constant 0 : index
    %c0_92 = arith.constant 0 : index
    %257 = vector.load %arg8[%c0_91, %c0_92] : memref<8x1xf32, #tpu.memory_space<vmem>>, vector<8x1xf32>
    tpu.vector_store %arg8[%c0_91, %c0_92], %256 {strides = array<i32>} : memref<8x1xf32, #tpu.memory_space<vmem>>, vector<8x1xf32>,
    return
  }
  func.func @transform_0(%arg0: i32) -> (i32, i32) {
    %c0_i32 = arith.constant 0 : i32
    %c0_i32_0 = arith.constant 0 : i32
    return %arg0, %c0_i32 : i32, i32
  }
  func.func @transform_1(%arg0: i32) -> (i32, i32) {
    %c0_i32 = arith.constant 0 : i32
    %c0_i32_0 = arith.constant 0 : i32
    %c0_i32_1 = arith.constant 0 : i32
    return %c0_i32, %c0_i32_0 : i32, i32
  }
  func.func @transform_2(%arg0: i32) -> (i32, i32) {
    %c0_i32 = arith.constant 0 : i32
    %c0_i32_0 = arith.constant 0 : i32
    %c0_i32_1 = arith.constant 0 : i32
    return %c0_i32, %c0_i32_0 : i32, i32
  }
  func.func @transform_3(%arg0: i32) -> (i32, i32) {
    %c0_i32 = arith.constant 0 : i32
    %c0_i32_0 = arith.constant 0 : i32
    %c0_i32_1 = arith.constant 0 : i32
    return %c0_i32, %c0_i32_0 : i32, i32
  }
  func.func @transform_4(%arg0: i32) -> (i32, i32) {
    %c0_i32 = arith.constant 0 : i32
    %c0_i32_0 = arith.constant 0 : i32
    %c0_i32_1 = arith.constant 0 : i32
    return %c0_i32, %c0_i32_0 : i32, i32
  }
  func.func @transform_5(%arg0: i32) -> (i32, i32) {
    %c0_i32 = arith.constant 0 : i32
    %c0_i32_0 = arith.constant 0 : i32
    %c0_i32_1 = arith.constant 0 : i32
    return %c0_i32, %c0_i32_0 : i32, i32
  }
  func.func @transform_6(%arg0: i32) -> (i32, i32) {
    %c0_i32 = arith.constant 0 : i32
    %c0_i32_0 = arith.constant 0 : i32
    %c0_i32_1 = arith.constant 0 : i32
    return %c0_i32, %c0_i32_0 : i32, i32
  }
  func.func @transform_7(%arg0: i32) -> (i32, i32) {
    %c0_i32 = arith.constant 0 : i32
    %c0_i32_0 = arith.constant 0 : i32
    return %arg0, %c0_i32 : i32, i32
  }
}

</mosaic_0001>

<bundles_post_ra>
// kernel: tpu_custom_call.1
= control target key start
LH: loop header
LB: loop body
LE: loop exit
PB: predicated region body
PF: predicated region fallthrough
CT: control target
= control target key end

     0   :  { %13 = vsyncpa [#allocation4], 0  ;;  %s2022_s24 = smov [#allocation3]   ;;  %s2353_s0 = inlined_call_operand.vmem [shape: s32[64,1], index: 0, kind: input, shape index: {}]   ;;  %s2354_s1 = inlined_call_operand.vmem [shape: f32[8,128], index: 1, kind: input, shape index: {}]   ;;  %s2355_s2 = inlined_call_operand.vmem [shape: f32[32,128], index: 2, kind: input, shape index: {}]   ;;  %s2356_s3 = inlined_call_operand.hbm [shape: f32[256,128], index: 3, kind: input, shape index: {}]   ;;  %s2357_s4 = inlined_call_operand.vmem [shape: f32[1,128], index: 4, kind: input, shape index: {}]   ;;  %s2358_s5 = inlined_call_operand.vmem [shape: f32[1,128], index: 5, kind: input, shape index: {}]   ;;  %s2359_s6 = inlined_call_operand.<no memory space> [shape: f32[1,1], index: 6, kind: input, shape index: {}]   ;;  %s2360_s7 = inlined_call_operand.vmem [shape: f32[8,1], index: 7, kind: output, shape index: {}]  }
   0x1   :  { %s25_s25 = sshll.u32 %s2022_s24, 4  ;;  %s26_s25 = int_to_ptr.vmem [resolvable:$true] %s25_s25 }
   0x2   :  { %s2008_s26 = scalar_lea.vmem %s26_s25, 4096  ;;  %p2013_p1 = scmp.lt.s32.totalorder %s26_s25, %s26_s25 }
   0x3   :  { %p2009_p0 = scmp.ne.s32.totalorder %s26_s25, %s2008_s26  ;;  %p2014_p2 = scmp.lt.s32.totalorder %s2008_s26, %s2008_s26 }
   0x5   :  { %p2015_p3 = por %p2014_p2, %p2013_p1 }
   0x7   :  { %p2016_p4 = pnand %p2015_p3, %p2009_p0 }
   0x9   :  { %2019 = shalt.err (!%p2016_p4)
}
   0xa   :  { %s2023_s27 = smov 128   ;;  %s2024_s28 = smov 8  }
   0xb   :  { %31 = dma.hbm_to_vmem [thread:$0]  %s2356_s3, 4096, %s26_s25, [#allocation4], %s2023_s27, %s2023_s27, %s2024_s28  }
   0xc   :  { %2020 = dma.done.wait [#allocation4], 4096  }
   0xd   :  { %2021 = vsyncadd [#allocation4], 4294963200  ;;  %v2025_v0 = vmov 0   ;;  %v2026_v1 = vmov 0.0   ;;  %v41_v2 = vld [vmem:[%s2353_s0] sm:$0xff]  ;;  %v2080_v3 = vld [vmem:[%s2355_s2 + $0x18] sm:$0xff]  ;;  %v49_v9 = vlaneseq }
   0xe   :  { %1962 = vset.pattern.permute.xlu0 %v2025_v0  ;;  %1778 = vmatprep.subr.mxu1 %v2026_v1  ;;  %v2086_v4 = vld [vmem:[%s2355_s2 + $0x10] sm:$0xff]  ;;  %v99_v5 = vld [vmem:[%s2354_s1] sm:$0xff]  ;;  %v42_v6 = vld [vmem:[%s2353_s0 + $0x8] sm:$0xff]  ;;  %vm2027_vm0 = vmmov 0   ;;  %vm100_vm1 = vcmask 64512   ;;  %s2028_s1 = smov 64  }
   0xf   :  { %1963 = vset.pattern.permute.xlu1 %v2025_v0  ;;  %52 = vperm.xlu0 %1962, %v41_v2   ;;  %v2098_v7 = vld [vmem:[%s2355_s2 + $0x8] sm:$0xff]  ;;  %v2105_v8 = vld [vmem:[%s2355_s2] sm:$0xff]  ;;  %v2125_v10 = vand.u32 127, %v49_v9  ;;  %s2029_s2 = smov 32   ;;  %vm234_vm4 = vcmask 261120   ;;  %v332_v31 = vld [vmem:[#allocation3 + $0x18] sm:$0xff] }
  0x10   :  { %1779 = vmatpush3.msra.mxu1 %v2080_v3  ;;  %1764 = vmatprep.subr.mxu0 %v99_v5  ;;  %v331_v33 = vld [vmem:[#allocation3 + $0x10] sm:$0xff]  ;;  %v330_v34 = vld [vmem:[#allocation3 + $0x8] sm:$0xff]  ;;  %v329_v35 = vld [vmem:[#allocation3] sm:$0xff]  ;;  %vm1634_vm12 = vcmask 7168  }
  0x11   :  { %1780 = vmatprep.subr.mxu1 %v2026_v1  ;;  %1765 = vmatpush3.msra.mxu0 %v99_v5  ;;  %v43_v46 = vld [vmem:[%s2353_s0 + $0x10] sm:$0xff]  ;;  %v45_v47 = vld [vmem:[%s2353_s0 + $0x20] sm:$0xff]  ;;  %v44_v55 = vld [vmem:[%s2353_s0 + $0x18] sm:$0xff] }
  0x12   :  { %1781 = vmatpush3.msra.mxu1 %v2086_v4  ;;  %1786 = vmatprep.mubr.msk.f32.mxu1 %vm2027_vm0, %v2026_v1  ;;  %v47_v48 = vld [vmem:[%s2353_s0 + $0x30] sm:$0xff]  ;;  %v46_v56 = vld [vmem:[%s2353_s0 + $0x28] sm:$0xff]  ;;  %v48_v57 = vld [vmem:[%s2353_s0 + $0x38] sm:$0xff] }
  0x13   :  { %1782 = vmatprep.subr.mxu1 %v2026_v1  ;;  %55 = vperm.xlu0 %1962, %v42_v6   ;;  %v432_v58 = vld [vmem:[#allocation3 + $0x38] sm:$0xff]  ;;  %v431_v59 = vld [vmem:[#allocation3 + $0x30] sm:$0xff]  ;;  %v430_v60 = vld [vmem:[#allocation3 + $0x28] sm:$0xff] }
  0x14   :  { %1783 = vmatpush3.msra.mxu1 %v2098_v7  ;;  %1800 = vmatprep.subr.mxu0 %v2026_v1  ;;  %v429_v61 = vld [vmem:[#allocation3 + $0x20] sm:$0xff] }
  0x15   :  { %1784 = vmatprep.subr.mxu1 %v2026_v1 }
  0x16   :  { %1785 = vmatpush3.msra.mxu1 %v2105_v8 }
  0x17   :  { %1787 = vmatmul.mubr.f32.vlgmr.msra.gmra.mxu1 %v2026_v1  ;;  %1789 = vmatprep.subr.mxu1 %v2026_v1 }
  0x18   :  { %1790 = vmatpush3.msra.mxu1 %v2080_v3  ;;  %1797 = vmatprep.mubr.msk.f32.mxu1 %vm2027_vm0, %v2026_v1 }
  0x19   :  { %1791 = vmatprep.subr.mxu1 %v2026_v1 }
  0x1a   :  { %1792 = vmatpush3.msra.mxu1 %v2086_v4 }
  0x1b   :  { %1793 = vmatprep.subr.mxu1 %v2026_v1 }
  0x1c   :  { %1794 = vmatpush3.msra.mxu1 %v2098_v7 }
  0x1d   :  { %1795 = vmatprep.subr.mxu1 %v2026_v1 }
  0x1e   :  { %1796 = vmatpush3.msra.mxu1 %v2105_v8 }
  0x1f   :  { %1811 = vmatprep.subr.mxu1 %v2026_v1 }
  0x8a   :  { %v53_v11 = vpop.permute.xlu0 %52 }
  0x8b   :  { %vm75_vm2 = vcmp.eq.s32.totalorder %v53_v11, %v2125_v10 }
  0x8c   :  { %v1641_v12 = vsel %vm75_vm2, 1.0, %v2026_v1 }
  0x8d   :  { %1766 = vmatprep.mubr.msk.f32.mxu0 %vm100_vm1, %v1641_v12 }
  0x8e   :  { %v56_v13 = vpop.permute.xlu0 %55 }
  0x8f   :  { %vm76_vm3 = vcmp.eq.s32.totalorder %v56_v13, %v2125_v10 }
  0x90   :  { %v1642_v14 = vsel %vm76_vm3, 1.0, %v2026_v1 }
  0x91   :  { %1767 = vmatmul.mubr.msk.f32.vlgmr.msra.gmra.mxu0 %vm100_vm1, %v1642_v14 }
  0x92   :  { %1801 = vmatpush3.msra.mxu0 %v432_v58 }
  0x93   :  { %1802 = vmatprep.subr.mxu0 %v2026_v1 }
  0x94   :  { %1803 = vmatpush3.msra.mxu0 %v431_v59  ;;  %v842_v59 = vld [vmem:[#allocation3 + $0x70] sm:$0xff] }
  0x95   :  { %1804 = vmatprep.subr.mxu0 %v2026_v1 }
  0x96   :  { %1805 = vmatpush3.msra.mxu0 %v430_v60  ;;  %v841_v60 = vld [vmem:[#allocation3 + $0x68] sm:$0xff] }
  0x97   :  { %1806 = vmatprep.subr.mxu0 %v2026_v1 }
  0x98   :  { %1807 = vmatpush3.msra.mxu0 %v429_v61  ;;  %v840_v61 = vld [vmem:[#allocation3 + $0x60] sm:$0xff] }
  0x99   :  { %1822 = vmatprep.subr.mxu0 %v2026_v1 }
  0xd7   :  { %v304_v15 = vpop.f32.mrf.mxu1 }
  0xd9   :  { %v1788_v16 = vpop.f32.mrf.mxu1 }
 0x151   :  { %v1768_v17 = vpop.f32.mrf.mxu0 }
 0x153   :  { %v191_v18 = vpop.f32.mrf.mxu0 }
 0x154   :  { %v308_v19 = vadd.f32 %v304_v15, %v191_v18 }
 0x156   :  { %1964 = vtanh.f32 %v308_v19 }
 0x163   :  { %v1965_v20 = vpop.eup %1964 }
 0x164   :  { %314 = vrot.lane.b32.xlu1 %v1965_v20, %s2028_s1  ;;  %v310_v21 = vmul.f32 0.5, %v1965_v20 }
 0x166   :  { %v311_v22 = vadd.f32 0.5, %v310_v21 }
 0x168   :  { %v312_v25 = vmul.f32 0.0, %v311_v22 }
 0x1d6   :  { %v315_v23 = vpop.permute.xlu1 %314 }
 0x1d7   :  { %v317_v24 = vmul.f32 %v315_v23, %v311_v22 }
 0x1d9   :  { %319 = vrot.lane.b32.xlu1 %v317_v24, %s2029_s2 }
 0x24b   :  { %v320_v26 = vpop.permute.xlu1 %319 }
 0x24c   :  { %v322_v27 = vadd.f32 %v320_v26, %v312_v25 }
 0x24e   :  { %1966 = vtanh.f32 %v322_v27 }
 0x25b   :  { %v1967_v28 = vpop.eup %1966 }
 0x25c   :  { %325 = vrot.lane.b32.xlu0 %v1967_v28, %s2028_s1 }
 0x2ce   :  { %v326_v29 = vpop.permute.xlu0 %325 }
 0x2cf   :  { %v328_v30 = vmul.f32 %v326_v29, %v311_v22 }
 0x2d1   :  { %334 = vrot.lane.b32.xlu1 %v328_v30, %s2029_s2 }
 0x343   :  { %v335_v32 = vpop.permute.xlu1 %334 }
 0x344   :  { %1798 = vmatmul.mubr.msk.f32.vlgmr.msra.gmra.mxu1 %vm234_vm4, %v335_v32 }
 0x345   :  { %1812 = vmatpush3.msra.mxu1 %v332_v31  ;;  %1819 = vmatprep.mubr.msk.f32.mxu1 %vm2027_vm0, %v2026_v1 }
 0x346   :  { %1813 = vmatprep.subr.mxu1 %v2026_v1 }
 0x347   :  { %1814 = vmatpush3.msra.mxu1 %v331_v33 }
 0x348   :  { %1815 = vmatprep.subr.mxu1 %v2026_v1 }
 0x349   :  { %1816 = vmatpush3.msra.mxu1 %v330_v34 }
 0x34a   :  { %1817 = vmatprep.subr.mxu1 %v2026_v1 }
 0x34b   :  { %1818 = vmatpush3.msra.mxu1 %v329_v35  ;;  %v672_v35 = vld [vmem:[#allocation3 + $0x58] sm:$0xff] }
 0x34c   :  { %1820 = vmatmul.mubr.msk.f32.vlgmr.msra.gmra.mxu1 %vm234_vm4, %v335_v32  ;;  %1833 = vmatprep.subr.mxu1 %v2026_v1 }
 0x34d   :  { %1841 = vmatprep.mubr.msk.f32.mxu1 %vm2027_vm0, %v2026_v1  ;;  %1834 = vmatpush3.msra.mxu1 %v672_v35 }
 0x34e   :  { %1835 = vmatprep.subr.mxu1 %v2026_v1 }
 0x404   :  { %v404_v36 = vpop.f32.mrf.mxu1 }
 0x405   :  { %v408_v37 = vadd.f32 %v1768_v17, %v404_v36  ;;  %v671_v36 = vld [vmem:[#allocation3 + $0x50] sm:$0xff] }
 0x406   :  { %v1799_v38 = vpop.f32.mrf.mxu1  ;;  %1836 = vmatpush3.msra.mxu1 %v671_v36 }
 0x407   :  { %1968 = vtanh.f32 %v408_v37  ;;  %v670_v37 = vld [vmem:[#allocation3 + $0x48] sm:$0xff]  ;;  %1837 = vmatprep.subr.mxu1 %v2026_v1  ;;  %v669_v38 = vld [vmem:[#allocation3 + $0x40] sm:$0xff] }
 0x408   :  { %1838 = vmatpush3.msra.mxu1 %v670_v37 }
 0x409   :  { %1839 = vmatprep.subr.mxu1 %v2026_v1 }
 0x40a   :  { %1840 = vmatpush3.msra.mxu1 %v669_v38 }
 0x40b   :  { %1855 = vmatprep.subr.mxu1 %v2026_v1 }
 0x40c   :  { %v2147_v39 = vpop.f32.mrf.mxu1 }
 0x40e   :  { %v1821_v40 = vpop.f32.mrf.mxu1 }
 0x414   :  { %v1969_v41 = vpop.eup %1968 }
 0x415   :  { %414 = vrot.lane.b32.xlu0 %v1969_v41, %s2028_s1  ;;  %v410_v42 = vmul.f32 0.5, %v1969_v41 }
 0x417   :  { %v411_v43 = vadd.f32 0.5, %v410_v42 }
 0x419   :  { %v412_v49 = vmul.f32 %v411_v43, %v322_v27 }
 0x487   :  { %v415_v44 = vpop.permute.xlu0 %414 }
 0x488   :  { %v417_v45 = vmul.f32 %v415_v44, %v411_v43 }
 0x48a   :  { %419 = vrot.lane.b32.xlu1 %v417_v45, %s2029_s2 }
 0x48e   :  { %58 = vperm.xlu1 %1963, %v43_v46  }
 0x492   :  { %64 = vperm.xlu1 %1963, %v45_v47  }
 0x496   :  { %70 = vperm.xlu1 %1963, %v47_v48  }
 0x4fc   :  { %v420_v50 = vpop.permute.xlu1 %419 }
 0x4fd   :  { %v2160_v51 = vadd.f32 %v420_v50, %v412_v49 }
 0x4ff   :  { %1970 = vtanh.f32 %v2160_v51 }
 0x509   :  { %v59_v52 = vpop.permute.xlu1 %58 }
 0x50a   :  { %vm77_vm5 = vcmp.eq.s32.totalorder %v59_v52, %v2125_v10 }
 0x50b   :  { %v1643_v53 = vsel %vm77_vm5, 1.0, %v2026_v1 }
 0x50c   :  { %v1971_v54 = vpop.eup %1970  ;;  %1769 = vmatprep.mubr.msk.f32.mxu0 %vm100_vm1, %v1643_v53 }
 0x50d   :  { %425 = vrot.lane.b32.xlu0 %v1971_v54, %s2028_s1  ;;  %v65_v0 = vpop.permute.xlu1 %64 }
 0x50e   :  { %vm79_vm6 = vcmp.eq.s32.totalorder %v65_v0, %v2125_v10 }
 0x50f   :  { %v1645_v6 = vsel %vm79_vm6, 1.0, %v2026_v1 }
 0x511   :  { %61 = vperm.xlu0 %1962, %v44_v55   ;;  %v71_v2 = vpop.permute.xlu1 %70 }
 0x512   :  { %vm81_vm8 = vcmp.eq.s32.totalorder %v71_v2, %v2125_v10 }
 0x513   :  { %v1647_v12 = vsel %vm81_vm8, 1.0, %v2026_v1 }
 0x515   :  { %67 = vperm.xlu0 %1962, %v46_v56  }
 0x519   :  { %73 = vperm.xlu0 %1962, %v48_v57  }
 0x57f   :  { %v426_v62 = vpop.permute.xlu0 %425 }
 0x580   :  { %v428_v63 = vmul.f32 %v426_v62, %v411_v43 }
 0x582   :  { %434 = vrot.lane.b32.xlu1 %v428_v63, %s2029_s2 }
 0x58c   :  { %v62_v5 = vpop.permute.xlu0 %61 }
 0x58d   :  { %vm78_vm7 = vcmp.eq.s32.totalorder %v62_v5, %v2125_v10 }
 0x58e   :  { %v1644_v9 = vsel %vm78_vm7, 1.0, %v2026_v1 }
 0x58f   :  { %1770 = vmatmul.mubr.msk.f32.gmra.mxu0 %vm100_vm1, %v1644_v9 }
 0x590   :  { %v68_v11 = vpop.permute.xlu0 %67  ;;  %1772 = vmatprep.mubr.msk.f32.mxu0 %vm100_vm1, %v1645_v6 }
 0x591   :  { %vm80_vm9 = vcmp.eq.s32.totalorder %v68_v11, %v2125_v10 }
 0x592   :  { %v1646_v13 = vsel %vm80_vm9, 1.0, %v2026_v1 }
 0x593   :  { %1773 = vmatmul.mubr.msk.f32.gmra.mxu0 %vm100_vm1, %v1646_v13 }
 0x594   :  { %v74_v14 = vpop.permute.xlu0 %73  ;;  %1775 = vmatprep.mubr.msk.f32.mxu0 %vm100_vm1, %v1647_v12 }
 0x595   :  { %vm82_vm10 = vcmp.eq.s32.totalorder %v74_v14, %v2125_v10 }
 0x596   :  { %v1648_v15 = vsel %vm82_vm10, 1.0, %v2026_v1 }
 0x597   :  { %1776 = vmatmul.mubr.msk.f32.gmra.mxu0 %vm100_vm1, %v1648_v15 }
 0x598   :  { %1808 = vmatprep.mubr.msk.f32.mxu0 %vm2027_vm0, %v2026_v1 }
 0x5f4   :  { %v435_v16 = vpop.permute.xlu1 %434 }
 0x5f5   :  { %1809 = vmatmul.mubr.msk.f32.vlgmr.msra.gmra.mxu0 %vm234_vm4, %v435_v16 }
 0x5f6   :  { %1823 = vmatpush3.msra.mxu0 %v2080_v3  ;;  %1830 = vmatprep.mubr.msk.f32.mxu0 %vm2027_vm0, %v2026_v1 }
 0x5f7   :  { %1824 = vmatprep.subr.mxu0 %v2026_v1 }
 0x5f8   :  { %1825 = vmatpush3.msra.mxu0 %v2086_v4 }
 0x5f9   :  { %1826 = vmatprep.subr.mxu0 %v2026_v1 }
 0x5fa   :  { %1827 = vmatpush3.msra.mxu0 %v2098_v7 }
 0x5fb   :  { %1828 = vmatprep.subr.mxu0 %v2026_v1 }
 0x5fc   :  { %1829 = vmatpush3.msra.mxu0 %v2105_v8 }
 0x5fd   :  { %1831 = vmatmul.mubr.msk.f32.vlgmr.msra.gmra.mxu0 %vm234_vm4, %v435_v16  ;;  %1844 = vmatprep.subr.mxu0 %v2026_v1 }
 0x5fe   :  { %1845 = vmatpush3.msra.mxu0 %v2080_v3  ;;  %1852 = vmatprep.mubr.msk.f32.mxu0 %vm2027_vm0, %v2026_v1 }
 0x5ff   :  { %1846 = vmatprep.subr.mxu0 %v2026_v1 }
 0x600   :  { %1847 = vmatpush3.msra.mxu0 %v2086_v4 }
 0x601   :  { %1848 = vmatprep.subr.mxu0 %v2026_v1 }
 0x602   :  { %1849 = vmatpush3.msra.mxu0 %v2098_v7 }
 0x603   :  { %1850 = vmatprep.subr.mxu0 %v2026_v1 }
 0x604   :  { %1851 = vmatpush3.msra.mxu0 %v2105_v8 }
 0x605   :  { %1866 = vmatprep.subr.mxu0 %v2026_v1 }
 0x64f   :  { %v1771_v10 = vpop.f32.mrf.mxu0 }
 0x651   :  { %v201_v17 = vpop.f32.mrf.mxu0 }
 0x653   :  { %v2220_v18 = vpop.f32.mrf.mxu0 }
 0x655   :  { %v2222_v19 = vpop.f32.mrf.mxu0 }
 0x657   :  { %v2224_v20 = vpop.f32.mrf.mxu0 }
 0x659   :  { %v2226_v21 = vpop.f32.mrf.mxu0 }
 0x6b5   :  { %v504_v22 = vpop.f32.mrf.mxu0 }
 0x6b6   :  { %v575_v44 = vadd.f32 %v2147_v39, %v504_v22  ;;  %v843_v39 = vld [vmem:[#allocation3 + $0x78] sm:$0xff] }
 0x6b7   :  { %v1810_v23 = vpop.f32.mrf.mxu0 }
 0x6bd   :  { %v644_v24 = vpop.f32.mrf.mxu0 }
 0x6be   :  { %v648_v25 = vadd.f32 %v644_v24, %v201_v17 }
 0x6bf   :  { %v1832_v26 = vpop.f32.mrf.mxu0 }
 0x6c0   :  { %1972 = vtanh.f32 %v648_v25  ;;  %v1014_v25 = vld [vmem:[#allocation3 + $0x98] sm:$0xff]  ;;  %v1013_v26 = vld [vmem:[#allocation3 + $0x90] sm:$0xff] }
 0x6cd   :  { %v1973_v27 = vpop.eup %1972 }
 0x6ce   :  { %654 = vrot.lane.b32.xlu0 %v1973_v27, %s2028_s1  ;;  %v650_v28 = vmul.f32 0.5, %v1973_v27  ;;  %v1011_v27 = vld [vmem:[#allocation3 + $0x80] sm:$0xff] }
 0x6d0   :  { %v651_v29 = vadd.f32 0.5, %v650_v28 }
 0x6d2   :  { %v652_v32 = vmul.f32 %v651_v29, %v2160_v51 }
 0x740   :  { %v655_v30 = vpop.permute.xlu0 %654 }
 0x741   :  { %v657_v31 = vmul.f32 %v655_v30, %v651_v29 }
 0x743   :  { %659 = vrot.lane.b32.xlu1 %v657_v31, %s2029_s2 }
 0x7b5   :  { %v660_v33 = vpop.permute.xlu1 %659 }
 0x7b6   :  { %v662_v34 = vadd.f32 %v660_v33, %v652_v32 }
 0x7b8   :  { %1974 = vtanh.f32 %v662_v34 }
 0x7c5   :  { %v1975_v40 = vpop.eup %1974 }
 0x7c6   :  { %665 = vrot.lane.b32.xlu0 %v1975_v40, %s2028_s1 }
 0x838   :  { %v666_v41 = vpop.permute.xlu0 %665 }
 0x839   :  { %v668_v42 = vmul.f32 %v666_v41, %v651_v29 }
 0x83b   :  { %674 = vrot.lane.b32.xlu1 %v668_v42, %s2029_s2 }
 0x8ad   :  { %v675_v43 = vpop.permute.xlu1 %674 }
 0x8ae   :  { %1842 = vmatmul.mubr.msk.f32.vlgmr.msra.gmra.mxu1 %vm234_vm4, %v675_v43  ;;  %1853 = vmatmul.mubr.msk.f32.vlgmr.msra.gmra.mxu0 %vm234_vm4, %v675_v43 }
 0x8af   :  { %1867 = vmatpush3.msra.mxu0 %v2080_v3  ;;  %1863 = vmatprep.mubr.msk.f32.mxu1 %vm2027_vm0, %v2026_v1 }
 0x8b0   :  { %1868 = vmatprep.subr.mxu0 %v2026_v1  ;;  %1874 = vmatprep.mubr.msk.f32.mxu0 %vm2027_vm0, %v2026_v1 }
 0x8b1   :  { %1869 = vmatpush3.msra.mxu0 %v2086_v4  ;;  %1856 = vmatpush3.msra.mxu1 %v843_v39 }
 0x8b2   :  { %1870 = vmatprep.subr.mxu0 %v2026_v1  ;;  %1857 = vmatprep.subr.mxu1 %v2026_v1 }
 0x8b3   :  { %1871 = vmatpush3.msra.mxu0 %v2098_v7  ;;  %1858 = vmatpush3.msra.mxu1 %v842_v59 }
 0x8b4   :  { %1872 = vmatprep.subr.mxu0 %v2026_v1  ;;  %1859 = vmatprep.subr.mxu1 %v2026_v1 }
 0x8b5   :  { %1873 = vmatpush3.msra.mxu0 %v2105_v8  ;;  %1860 = vmatpush3.msra.mxu1 %v841_v60 }
 0x8b6   :  { %1888 = vmatprep.subr.mxu0 %v2026_v1  ;;  %1861 = vmatprep.subr.mxu1 %v2026_v1 }
 0x8b7   :  { %1862 = vmatpush3.msra.mxu1 %v840_v61 }
 0x8b8   :  { %1877 = vmatprep.subr.mxu1 %v2026_v1 }
 0x96e   :  { %v744_v45 = vpop.f32.mrf.mxu1  ;;  %v815_v46 = vpop.f32.mrf.mxu0 }
 0x96f   :  { %v748_v47 = vadd.f32 %v744_v45, %v575_v44  ;;  %v819_v48 = vadd.f32 %v1771_v10, %v815_v46 }
 0x970   :  { %v1843_v49 = vpop.f32.mrf.mxu1  ;;  %v1854_v50 = vpop.f32.mrf.mxu0 }
 0x971   :  { %1976 = vtanh.f32 %v819_v48  ;;  %v1184_v48 = vld [vmem:[#allocation3 + $0xb0] sm:$0xff]  ;;  %v1182_v49 = vld [vmem:[#allocation3 + $0xa0] sm:$0xff] }
 0x97e   :  { %v1977_v51 = vpop.eup %1976 }
 0x97f   :  { %825 = vrot.lane.b32.xlu0 %v1977_v51, %s2028_s1  ;;  %v821_v52 = vmul.f32 0.5, %v1977_v51 }
 0x981   :  { %v822_v53 = vadd.f32 0.5, %v821_v52 }
 0x983   :  { %v823_v56 = vmul.f32 %v822_v53, %v662_v34 }
 0x9f1   :  { %v826_v54 = vpop.permute.xlu0 %825 }
 0x9f2   :  { %v828_v55 = vmul.f32 %v826_v54, %v822_v53 }
 0x9f4   :  { %830 = vrot.lane.b32.xlu1 %v828_v55, %s2029_s2 }
 0xa66   :  { %v831_v57 = vpop.permute.xlu1 %830 }
 0xa67   :  { %v833_v58 = vadd.f32 %v831_v57, %v823_v56 }
 0xa69   :  { %1978 = vtanh.f32 %v833_v58 }
 0xa76   :  { %v1979_v62 = vpop.eup %1978 }
 0xa77   :  { %836 = vrot.lane.b32.xlu0 %v1979_v62, %s2028_s1 }
 0xae9   :  { %v837_v63 = vpop.permute.xlu0 %836 }
 0xaea   :  { %v839_v0 = vmul.f32 %v837_v63, %v822_v53  ;;  %v1356_v63 = vld [vmem:[#allocation3 + $0xd8] sm:$0xff] }
 0xaec   :  { %845 = vrot.lane.b32.xlu1 %v839_v0, %s2029_s2  ;;  %v1355_v0 = vld [vmem:[#allocation3 + $0xd0] sm:$0xff] }
 0xb5e   :  { %v846_v2 = vpop.permute.xlu1 %845 }
 0xb5f   :  { %1864 = vmatmul.mubr.msk.f32.vlgmr.msra.gmra.mxu1 %vm234_vm4, %v846_v2  ;;  %1875 = vmatmul.mubr.msk.f32.vlgmr.msra.gmra.mxu0 %vm234_vm4, %v846_v2  ;;  %v1353_v2 = vld [vmem:[#allocation3 + $0xc0] sm:$0xff] }
 0xb60   :  { %1889 = vmatpush3.msra.mxu0 %v2080_v3  ;;  %1885 = vmatprep.mubr.msk.f32.mxu1 %vm2027_vm0, %v2026_v1 }
 0xb61   :  { %1890 = vmatprep.subr.mxu0 %v2026_v1  ;;  %1896 = vmatprep.mubr.msk.f32.mxu0 %vm2027_vm0, %v2026_v1 }
 0xb62   :  { %1891 = vmatpush3.msra.mxu0 %v2086_v4  ;;  %1878 = vmatpush3.msra.mxu1 %v1014_v25 }
 0xb63   :  { %1892 = vmatprep.subr.mxu0 %v2026_v1  ;;  %1879 = vmatprep.subr.mxu1 %v2026_v1 }
 0xb64   :  { %1893 = vmatpush3.msra.mxu0 %v2098_v7  ;;  %1880 = vmatpush3.msra.mxu1 %v1013_v26 }
 0xb65   :  { %1894 = vmatprep.subr.mxu0 %v2026_v1  ;;  %1881 = vmatprep.subr.mxu1 %v2026_v1 }
 0xb66   :  { %1895 = vmatpush3.msra.mxu0 %v2105_v8 }
 0xb67   :  { %1910 = vmatprep.subr.mxu0 %v2026_v1 }
 0xc1f   :  { %v915_v5 = vpop.f32.mrf.mxu1  ;;  %v986_v6 = vpop.f32.mrf.mxu0 }
 0xc20   :  { %v919_v9 = vadd.f32 %v915_v5, %v748_v47  ;;  %v990_v11 = vadd.f32 %v986_v6, %v2222_v19  ;;  %v1012_v19 = vld [vmem:[#allocation3 + $0x88] sm:$0xff]  ;;  %v1185_v47 = vld [vmem:[#allocation3 + $0xb8] sm:$0xff] }
 0xc21   :  { %v1865_v12 = vpop.f32.mrf.mxu1  ;;  %v1876_v13 = vpop.f32.mrf.mxu0  ;;  %1882 = vmatpush3.msra.mxu1 %v1012_v19 }
 0xc22   :  { %1980 = vtanh.f32 %v990_v11  ;;  %1883 = vmatprep.subr.mxu1 %v2026_v1 }
 0xc23   :  { %1884 = vmatpush3.msra.mxu1 %v1011_v27 }
 0xc24   :  { %1899 = vmatprep.subr.mxu1 %v2026_v1 }
 0xc2f   :  { %v1981_v14 = vpop.eup %1980 }
 0xc30   :  { %996 = vrot.lane.b32.xlu0 %v1981_v14, %s2028_s1  ;;  %v992_v15 = vmul.f32 0.5, %v1981_v14 }
 0xc32   :  { %v993_v16 = vadd.f32 0.5, %v992_v15 }
 0xc34   :  { %v994_v22 = vmul.f32 %v993_v16, %v833_v58 }
 0xca2   :  { %v997_v10 = vpop.permute.xlu0 %996 }
 0xca3   :  { %v999_v17 = vmul.f32 %v997_v10, %v993_v16 }
 0xca5   :  { %1001 = vrot.lane.b32.xlu1 %v999_v17, %s2029_s2 }
 0xd17   :  { %v1002_v23 = vpop.permute.xlu1 %1001 }
 0xd18   :  { %v1004_v24 = vadd.f32 %v1002_v23, %v994_v22 }
 0xd1a   :  { %1982 = vtanh.f32 %v1004_v24 }
 0xd27   :  { %v1983_v28 = vpop.eup %1982 }
 0xd28   :  { %1007 = vrot.lane.b32.xlu0 %v1983_v28, %s2028_s1  ;;  %v1527_v28 = vld [vmem:[#allocation3 + $0xf8] sm:$0xff] }
 0xd9a   :  { %v1008_v29 = vpop.permute.xlu0 %1007 }
 0xd9b   :  { %v1010_v30 = vmul.f32 %v1008_v29, %v993_v16  ;;  %v1526_v29 = vld [vmem:[#allocation3 + $0xf0] sm:$0xff] }
 0xd9d   :  { %1016 = vrot.lane.b32.xlu1 %v1010_v30, %s2029_s2  ;;  %v1524_v30 = vld [vmem:[#allocation3 + $0xe0] sm:$0xff] }
 0xe0f   :  { %v1017_v31 = vpop.permute.xlu1 %1016 }
 0xe10   :  { %1886 = vmatmul.mubr.msk.f32.vlgmr.msra.gmra.mxu1 %vm234_vm4, %v1017_v31  ;;  %1897 = vmatmul.mubr.msk.f32.vlgmr.msra.gmra.mxu0 %vm234_vm4, %v1017_v31 }
 0xe11   :  { %1911 = vmatpush3.msra.mxu0 %v2080_v3  ;;  %1907 = vmatprep.mubr.msk.f32.mxu1 %vm2027_vm0, %v2026_v1 }
 0xe12   :  { %1912 = vmatprep.subr.mxu0 %v2026_v1  ;;  %1918 = vmatprep.mubr.msk.f32.mxu0 %vm2027_vm0, %v2026_v1 }
 0xe13   :  { %1913 = vmatpush3.msra.mxu0 %v2086_v4  ;;  %1900 = vmatpush3.msra.mxu1 %v1185_v47 }
 0xe14   :  { %1914 = vmatprep.subr.mxu0 %v2026_v1  ;;  %1901 = vmatprep.subr.mxu1 %v2026_v1 }
 0xe15   :  { %1915 = vmatpush3.msra.mxu0 %v2098_v7  ;;  %1902 = vmatpush3.msra.mxu1 %v1184_v48 }
 0xe16   :  { %1916 = vmatprep.subr.mxu0 %v2026_v1  ;;  %1903 = vmatprep.subr.mxu1 %v2026_v1 }
 0xe17   :  { %1917 = vmatpush3.msra.mxu0 %v2105_v8 }
 0xe18   :  { %1932 = vmatprep.subr.mxu0 %v2026_v1 }
 0xed0   :  { %v1086_v32 = vpop.f32.mrf.mxu1  ;;  %v1157_v33 = vpop.f32.mrf.mxu0 }
 0xed1   :  { %v1090_v34 = vadd.f32 %v1086_v32, %v919_v9  ;;  %v1161_v35 = vadd.f32 %v2220_v18, %v1157_v33  ;;  %v1183_v18 = vld [vmem:[#allocation3 + $0xa8] sm:$0xff] }
 0xed2   :  { %v1887_v36 = vpop.f32.mrf.mxu1  ;;  %v1898_v37 = vpop.f32.mrf.mxu0  ;;  %1904 = vmatpush3.msra.mxu1 %v1183_v18 }
 0xed3   :  { %1984 = vtanh.f32 %v1161_v35  ;;  %1905 = vmatprep.subr.mxu1 %v2026_v1  ;;  %v1672_v36 = vld [vmem:[%s2357_s4] ss:$0 sm:$0xff] }
 0xed4   :  { %1906 = vmatpush3.msra.mxu1 %v1182_v49 }
 0xed5   :  { %1921 = vmatprep.subr.mxu1 %v2026_v1 }
 0xee0   :  { %v1985_v38 = vpop.eup %1984 }
 0xee1   :  { %1167 = vrot.lane.b32.xlu0 %v1985_v38, %s2028_s1  ;;  %v1163_v40 = vmul.f32 0.5, %v1985_v38 }
 0xee3   :  { %v1164_v41 = vadd.f32 0.5, %v1163_v40 }
 0xee5   :  { %v1165_v44 = vmul.f32 %v1164_v41, %v1004_v24 }
 0xf53   :  { %v1168_v42 = vpop.permute.xlu0 %1167 }
 0xf54   :  { %v1170_v43 = vmul.f32 %v1168_v42, %v1164_v41 }
 0xf56   :  { %1172 = vrot.lane.b32.xlu1 %v1170_v43, %s2029_s2 }
 0xfc8   :  { %v1173_v45 = vpop.permute.xlu1 %1172 }
 0xfc9   :  { %v1175_v46 = vadd.f32 %v1173_v45, %v1165_v44  ;;  %v1626_v44 = vstv %s2359_s6 }
 0xfcb   :  { %1986 = vtanh.f32 %v1175_v46 }
 0xfd8   :  { %v1987_v50 = vpop.eup %1986 }
 0xfd9   :  { %1178 = vrot.lane.b32.xlu0 %v1987_v50, %s2028_s1 }
0x104b   :  { %v1179_v51 = vpop.permute.xlu0 %1178 }
0x104c   :  { %v1181_v52 = vmul.f32 %v1179_v51, %v1164_v41  ;;  %v1673_v41 = vld [vmem:[%s2358_s5] ss:$0 sm:$0xff] }
0x104e   :  { %1187 = vrot.lane.b32.xlu1 %v1181_v52, %s2029_s2 }
0x10c0   :  { %v1188_v53 = vpop.permute.xlu1 %1187 }
0x10c1   :  { %1908 = vmatmul.mubr.msk.f32.vlgmr.msra.gmra.mxu1 %vm234_vm4, %v1188_v53  ;;  %1919 = vmatmul.mubr.msk.f32.vlgmr.msra.gmra.mxu0 %vm234_vm4, %v1188_v53 }
0x10c2   :  { %1933 = vmatpush3.msra.mxu0 %v2080_v3  ;;  %1929 = vmatprep.mubr.msk.f32.mxu1 %vm2027_vm0, %v2026_v1 }
0x10c3   :  { %1934 = vmatprep.subr.mxu0 %v2026_v1  ;;  %1940 = vmatprep.mubr.msk.f32.mxu0 %vm2027_vm0, %v2026_v1 }
0x10c4   :  { %1935 = vmatpush3.msra.mxu0 %v2086_v4  ;;  %1922 = vmatpush3.msra.mxu1 %v1356_v63 }
0x10c5   :  { %1936 = vmatprep.subr.mxu0 %v2026_v1  ;;  %1923 = vmatprep.subr.mxu1 %v2026_v1 }
0x10c6   :  { %1937 = vmatpush3.msra.mxu0 %v2098_v7  ;;  %1924 = vmatpush3.msra.mxu1 %v1355_v0 }
0x10c7   :  { %1938 = vmatprep.subr.mxu0 %v2026_v1  ;;  %1925 = vmatprep.subr.mxu1 %v2026_v1 }
0x10c8   :  { %1939 = vmatpush3.msra.mxu0 %v2105_v8 }
0x1181   :  { %v1257_v54 = vpop.f32.mrf.mxu1  ;;  %v1328_v3 = vpop.f32.mrf.mxu0 }
0x1182   :  { %v1261_v55 = vadd.f32 %v1257_v54, %v1090_v34  ;;  %v1332_v56 = vadd.f32 %v1328_v3, %v2226_v21  ;;  %v1354_v21 = vld [vmem:[#allocation3 + $0xc8] sm:$0xff] }
0x1183   :  { %v1909_v57 = vpop.f32.mrf.mxu1  ;;  %v1920_v58 = vpop.f32.mrf.mxu0  ;;  %1926 = vmatpush3.msra.mxu1 %v1354_v21 }
0x1184   :  { %1988 = vtanh.f32 %v1332_v56  ;;  %1927 = vmatprep.subr.mxu1 %v2026_v1 }
0x1185   :  { %1928 = vmatpush3.msra.mxu1 %v1353_v2 }
0x1186   :  { %1943 = vmatprep.subr.mxu1 %v2026_v1 }
0x1191   :  { %v1989_v39 = vpop.eup %1988 }
0x1192   :  { %1338 = vrot.lane.b32.xlu0 %v1989_v39, %s2028_s1  ;;  %v1334_v4 = vmul.f32 0.5, %v1989_v39 }
0x1194   :  { %v1335_v59 = vadd.f32 0.5, %v1334_v4 }
0x1196   :  { %v1336_v7 = vmul.f32 %v1335_v59, %v1175_v46 }
0x1204   :  { %v1339_v60 = vpop.permute.xlu0 %1338 }
0x1205   :  { %v1341_v61 = vmul.f32 %v1339_v60, %v1335_v59 }
0x1207   :  { %1343 = vrot.lane.b32.xlu1 %v1341_v61, %s2029_s2 }
0x1279   :  { %v1344_v62 = vpop.permute.xlu1 %1343 }
0x127a   :  { %v1346_v8 = vadd.f32 %v1344_v62, %v1336_v7 }
0x127c   :  { %1990 = vtanh.f32 %v1346_v8 }
0x1289   :  { %v1991_v5 = vpop.eup %1990 }
0x128a   :  { %1349 = vrot.lane.b32.xlu0 %v1991_v5, %s2028_s1 }
0x12fc   :  { %v1350_v6 = vpop.permute.xlu0 %1349 }
0x12fd   :  { %v1352_v9 = vmul.f32 %v1350_v6, %v1335_v59 }
0x12ff   :  { %1358 = vrot.lane.b32.xlu1 %v1352_v9, %s2029_s2 }
0x1371   :  { %v1359_v11 = vpop.permute.xlu1 %1358 }
0x1372   :  { %1930 = vmatmul.mubr.msk.f32.vlgmr.msra.gmra.mxu1 %vm234_vm4, %v1359_v11  ;;  %1941 = vmatmul.mubr.msk.f32.vlgmr.msra.gmra.mxu0 %vm234_vm4, %v1359_v11 }
0x1373   :  { %1951 = vmatprep.mubr.msk.f32.mxu1 %vm2027_vm0, %v2026_v1  ;;  %1944 = vmatpush3.msra.mxu1 %v1527_v28 }
0x1374   :  { %1945 = vmatprep.subr.mxu1 %v2026_v1 }
0x1375   :  { %1946 = vmatpush3.msra.mxu1 %v1526_v29 }
0x1376   :  { %1947 = vmatprep.subr.mxu1 %v2026_v1 }
0x1432   :  { %v1428_v12 = vpop.f32.mrf.mxu1  ;;  %v1499_v13 = vpop.f32.mrf.mxu0 }
0x1433   :  { %v1432_v14 = vadd.f32 %v1428_v12, %v1261_v55  ;;  %v1503_v15 = vadd.f32 %v2224_v20, %v1499_v13  ;;  %v1525_v20 = vld [vmem:[#allocation3 + $0xe8] sm:$0xff] }
0x1434   :  { %v1931_v16 = vpop.f32.mrf.mxu1  ;;  %v1942_v10 = vpop.f32.mrf.mxu0  ;;  %1948 = vmatpush3.msra.mxu1 %v1525_v20 }
0x1435   :  { %1992 = vtanh.f32 %v1503_v15  ;;  %1949 = vmatprep.subr.mxu1 %v2026_v1 }
0x1436   :  { %1950 = vmatpush3.msra.mxu1 %v1524_v30 }
0x1442   :  { %v1993_v17 = vpop.eup %1992 }
0x1443   :  { %1509 = vrot.lane.b32.xlu0 %v1993_v17, %s2028_s1  ;;  %v1505_v22 = vmul.f32 0.5, %v1993_v17 }
0x1445   :  { %v1506_v23 = vadd.f32 0.5, %v1505_v22 }
0x1447   :  { %v1507_v26 = vmul.f32 %v1506_v23, %v1346_v8 }
0x14b5   :  { %v1510_v24 = vpop.permute.xlu0 %1509 }
0x14b6   :  { %v1512_v25 = vmul.f32 %v1510_v24, %v1506_v23 }
0x14b8   :  { %1514 = vrot.lane.b32.xlu1 %v1512_v25, %s2029_s2 }
0x152a   :  { %v1515_v19 = vpop.permute.xlu1 %1514 }
0x152b   :  { %v1517_v27 = vadd.f32 %v1515_v19, %v1507_v26 }
0x152d   :  { %1994 = vtanh.f32 %v1517_v27 }
0x153a   :  { %v1995_v31 = vpop.eup %1994 }
0x153b   :  { %1520 = vrot.lane.b32.xlu0 %v1995_v31, %s2028_s1 }
0x15ad   :  { %v1521_v32 = vpop.permute.xlu0 %1520 }
0x15ae   :  { %v1523_v33 = vmul.f32 %v1521_v32, %v1506_v23 }
0x15b0   :  { %1529 = vrot.lane.b32.xlu1 %v1523_v33, %s2029_s2 }
0x1622   :  { %v1530_v34 = vpop.permute.xlu1 %1529 }
0x1623   :  { %1952 = vmatmul.mubr.msk.f32.vlgmr.msra.gmra.mxu1 %vm234_vm4, %v1530_v34 }
0x16e3   :  { %v1599_v35 = vpop.f32.mrf.mxu1 }
0x16e4   :  { %v1603_v37 = vadd.f32 %v1599_v35, %v1432_v14 }
0x16e5   :  { %v1953_v38 = vpop.f32.mrf.mxu1 }
0x16e6   :  { %v1611_v40 = vadd.f32 %v1672_v36, %v1603_v37 }
0x16e8   :  { %vm1612_vm11 = vcmp.ge.f32.partialorder %v1611_v40, 0.0  ;;  %v1613_v1 = vmul.f32 0.01, %v1611_v40 }
0x16ea   :  { %v1614_v42 = vsel %vm1612_vm11, %v1611_v40, %v1613_v1 }
0x16eb   :  { %v1622_v43 = vmul.f32 %v1673_v41, %v1614_v42 }
0x16ed   :  { %1623 = vadd.xlane.f32.xlu0 %v1622_v43 }
0x1776   :  { %v1624_v45 = vpop.xlane.xlu0 %1623 }
0x1777   :  { %v1627_v46 = vadd.f32 %v1626_v44, %v1624_v45 }
0x1779   :  { %v1674_v47 = vmul.f32 -1.442695, %v1627_v46 }
0x177b   :  { %1996 = vpow2.f32 %v1674_v47 }
0x1788   :  { %v1997_v48 = vpop.eup %1996 }
0x1789   :  { %v1631_v18 = vadd.f32 1.0, %v1997_v48 }
0x178b   :  { %1998 = vrcp.f32 %v1631_v18 }
0x1798   :  { %v1999_v49 = vpop.eup %1998 }
0x1799   :  { %1635 = vst.msk [vmem:[%s2360_s7] sm:$0xff] %vm1634_vm12, %v1999_v49 }
0x179a   :  { %1640 = vsyncpa [#allocation4], 1 }

</bundles_post_ra>
